<compile_context>
chip_gen: v5e
topology: v5e:2x2
jax: 0.10.0
libtpu: 0.0.40
codegen_flags: <defaults>
</compile_context>

<pallas_src>
import math

import jax
import jax.numpy as jnp
from jax.experimental import pallas as pl
from jax.experimental.pallas import tpu as pltpu


# ----------------------------- score kernel ---------------------------------

def _gatv2_score_kernel(params_ref, x_ref, wr_ref, xl_ref, adj_ref, score_ref):
    # params (SMEM): [att, b_r, b_o]   (out_channels == 1, heads == 1)
    att = params_ref[0]
    b_r = params_ref[1]
    b_o = params_ref[2]

    # xr[i] = <x[i,:], w_r> + b_r  -- VPU multiply + small lane reduce;
    # deliberately not an MXU GEMV (output dim is 1, MXU would be ~1/256 used).
    xr = jnp.sum(x_ref[...] * wr_ref[...], axis=1, keepdims=True) + b_r    # [TM, 1]
    xl = xl_ref[...]                                                        # [1, N]

    m = xr + xl                                   # m[i, j] = xr[i] + xl[j]  [TM, N]
    m = jnp.where(m > 0.0, m, 0.2 * m)            # LeakyReLU, negative_slope=0.2
    e = m * att                                   # attention logits

    edge = adj_ref[...].astype(jnp.float32)       # int8 {0,1} mask -> f32
    e = jnp.where(edge > 0.0, e, -1e30)           # mask non-edges
    e_max = jnp.max(e, axis=1, keepdims=True)     # self-loops keep e_max finite
    p = jnp.exp(e - e_max)                        # masked entries underflow to 0
    denom = jnp.sum(p, axis=1, keepdims=True)
    num = jnp.sum(p * xl, axis=1, keepdims=True)  # sum_j softmax_j * x_l[j]

    # Fold 1/denom into a [TM,1] EUP reciprocal instead of an [TM,N] divide.
    score_ref[...] = num * pl.reciprocal(denom, approx=True) + b_o


def gatv2_score(x, w_r, params, xl_row, adj, block_rows=None):
    """Dense GATv2 per-node score.  Returns (N, 1) float32."""
    N, F = x.shape
    if block_rows is None:
        # Small graphs: one full block.  Larger: 256-row tiles (multiple of the
        # int8 sublane pack).  For very large N shrink further so the two
        # (TM, N) int8 buffers + f32 temporaries fit scoped VMEM (64 MiB on v7x).
        block_rows = N if N <= 256 else 256
    TM = block_rows
    grid = (pl.cdiv(N, TM),)
    return pl.pallas_call(
        _gatv2_score_kernel,
        out_shape=jax.ShapeDtypeStruct((N, 1), jnp.float32),
        grid=grid,
        in_specs=[
            pl.BlockSpec(memory_space=pltpu.MemorySpace.SMEM),   # params (3,) scalars
            pl.BlockSpec((TM, F), lambda i: (i, 0)),             # x row tile
            pl.BlockSpec((1, F), lambda i: (0, 0)),              # w_r (resident)
            pl.BlockSpec((1, N), lambda i: (0, 0)),              # xl row (resident)
            pl.BlockSpec((TM, N), lambda i: (i, 0)),             # adj int8 row tile
        ],
        out_specs=pl.BlockSpec((TM, 1), lambda i: (i, 0)),
        compiler_params=pltpu.CompilerParams(
            dimension_semantics=("parallel",)),                  # v7x dual-TC sharding
    )(params, x, w_r, xl_row, adj)


# ------------------------------ gate kernel ----------------------------------
# out[i, :] = x[perm[i], :] * tanh(score[perm[i]])
# perm is scalar-prefetched into SMEM and drives the row gather through the
# index_map, so the XLA gather that used to materialize x[perm] is eliminated.

def _gate_kernel(perm_ref, x_ref, s_ref, o_ref):
    del perm_ref  # only consumed by the index_maps
    o_ref[...] = x_ref[...] * jnp.tanh(s_ref[...])


def gate_gather(x, score_col, perm):
    N, F = x.shape
    K = perm.shape[0]
    # 3-D layout so the gathered row axis is a leading dim and the last two
    # block dims equal the full array dims (always tiling-legal).
    x3 = x.reshape(N, 1, F)
    s3 = score_col.reshape(N, 1, 1)
    out = pl.pallas_call(
        _gate_kernel,
        out_shape=jax.ShapeDtypeStruct((K, 1, F), x.dtype),
        grid_spec=pltpu.PrefetchScalarGridSpec(
            num_scalar_prefetch=1,
            grid=(K,),
            in_specs=[
                pl.BlockSpec((pl.Element(1), 1, F), lambda i, perm: (perm[i], 0, 0)),
                pl.BlockSpec((pl.Element(1), 1, 1), lambda i, perm: (perm[i], 0, 0)),
            ],
            out_specs=pl.BlockSpec((1, 1, F), lambda i, perm: (i, 0, 0)),
        ),
        compiler_params=pltpu.CompilerParams(
            dimension_semantics=("arbitrary",)),
    )(perm, x3, s3)
    # TODO(synk): for large K*F, tile K onto lanes (or pad F to 128) for dense
    # vector stores; at SAGPool scales the gather fusion is the dominant win.
    return out.reshape(K, F)


# --------------------------- JAX glue (non-kernel) ---------------------------

def filter_adj(edge_index, edge_attr, perm, num_nodes):
    # torch_geometric.nn.pool.topk_pool.filter_adj semantics.
    mask = jnp.full((num_nodes,), -1, dtype=jnp.int32)
    mask = mask.at[perm].set(jnp.arange(perm.shape[0], dtype=jnp.int32))
    row, col = edge_index[0], edge_index[1]
    row_m, col_m = mask[row], mask[col]
    keep = (row_m >= 0) & (col_m >= 0)
    # NOTE: dynamic-length output -> evaluated on concrete arrays (not jitted).
    new_ei = jnp.stack([row_m[keep], col_m[keep]])
    new_ea = None if edge_attr is None else edge_attr[keep]
    return new_ei, new_ea


class SAGPoolPallas:
    def __init__(self, in_channels, ratio=0.8, users=5, key=jax.random.PRNGKey(0)):
        self.in_channels = in_channels
        self.ratio = ratio
        self.users = int(users)
        self.user_id = jnp.arange(self.users, dtype=jnp.int32)

        # GATv2Conv(in_channels, 1, edge_dim=1) parameters, heads=1.
        k1, k2, k3 = jax.random.split(key, 3)
        scale = math.sqrt(1.0 / in_channels)
        self.w_l = jax.random.normal(k1, (1, in_channels), jnp.float32) * scale  # lin_l.weight
        self.w_r = jax.random.normal(k2, (1, in_channels), jnp.float32) * scale  # lin_r.weight
        self.b_l = jnp.zeros((1, 1), jnp.float32)                                # lin_l.bias
        self.b_r = jnp.zeros((1, 1), jnp.float32)                                # lin_r.bias
        self.att = jax.random.normal(k3, (1, 1), jnp.float32)                    # att [1,1,1]
        self.b_o = jnp.zeros((1, 1), jnp.float32)                                # output bias
        # TODO(synk): lin_edge (edge_dim=1) exists in the PyTorch module but is
        # never exercised because forward() calls score_layer(x, edge_index)
        # without edge_attr; it is therefore omitted.

    def forward(self, x, edge_index, edge_attr=None, batch=None, n_id=None,
                block_rows=None):
        N = x.shape[0]
        if batch is None:
            batch = jnp.zeros((N,), dtype=jnp.int32)
        if n_id is None:
            n_id = jnp.arange(N, dtype=jnp.int32)

        # Dense int8 adjacency for the score layer (GATv2Conv add_self_loops=True).
        # TODO(synk): duplicate edges collapse to a single 1 here, whereas a
        # sparse edge-segment formulation would weight each duplicate message.
        src, dst = edge_index[0], edge_index[1]
        adj = jnp.zeros((N, N), jnp.int8).at[dst, src].set(1)
        diag = jnp.arange(N)
        adj = adj.at[diag, diag].set(1)

        # Tiny O(N*F) lin_l projection as a lane-major [1, N] row; replaces the
        # transposed [F, N] duplicate of x (halves the kernel's x DMA).
        xl_row = (x @ self.w_l.T + self.b_l).reshape(1, N)
        params = jnp.concatenate(
            [self.att.ravel(), self.b_r.ravel(), self.b_o.ravel()]).astype(jnp.float32)

        score_col = gatv2_score(x, self.w_r, params, xl_row, adj,
                                block_rows=block_rows)            # [N, 1]
        score = score_col[:, 0]                                   # .squeeze() -> [N]

        # topk(score[users:], ratio, batch[users:]); batch is all zeros here, so
        # a single graph of (N - users) nodes with k = ceil(ratio * size).
        # NOTE: like the PyTorch reference, the tail-relative indices are used
        # directly (no `+ users` offset) before concatenating user_id.
        tail = score[self.users:]
        k = int(math.ceil(self.ratio * tail.shape[0]))
        _, perm_tail = jax.lax.top_k(tail, k)                     # descending, like PyG topk
        perm = jnp.concatenate([perm_tail.astype(jnp.int32), self.user_id], axis=0)

        x_out = gate_gather(x, score_col, perm)                   # x[perm] * tanh(score[perm])

        n_id = n_id[perm]
        batch = batch[perm]
        edge_index, edge_attr = filter_adj(edge_index, edge_attr, perm, num_nodes=N)
        return x_out, edge_index, edge_attr, batch, perm, n_id


# ------------------------------- demo ----------------------------------------

if __name__ == "__main__":
    key = jax.random.PRNGKey(0)
    kx, ks, kd, ka = jax.random.split(key, 4)

    N, F, E, users = 64, 8, 160, 5
    x = jax.random.normal(kx, (N, F), jnp.float32)
    src = jax.random.randint(ks, (E,), 0, N, dtype=jnp.int32)
    dst = jax.random.randint(kd, (E,), 0, N, dtype=jnp.int32)
    edge_index = jnp.stack([src, dst])
    edge_attr = jax.random.normal(ka, (E, 1), jnp.float32)

    pool = SAGPoolPallas(in_channels=F, ratio=0.8, users=users,
                         key=jax.random.PRNGKey(0))
    # block_rows=32 -> grid=(2,), exercises the row-tiled, pipelined path.
    x_out, ei, ea, batch, perm, n_id = pool.forward(x, edge_index, edge_attr,
                                                    block_rows=32)
    jax.block_until_ready(x_out)
    jax.block_until_ready(ei)

    k_expected = int(math.ceil(0.8 * (N - users))) + users
    assert x_out.shape == (k_expected, F)
    assert bool(jnp.all(jnp.isfinite(x_out)))

    # --- numerical sanity check of the score kernel vs a plain-jnp reference ---
    adj_chk = jnp.zeros((N, N), jnp.int8).at[dst, src].set(1)
    diag = jnp.arange(N)
    adj_chk = adj_chk.at[diag, diag].set(1)
    xl_chk = (x @ pool.w_l.T + pool.b_l).reshape(1, N)
    params_chk = jnp.concatenate(
        [pool.att.ravel(), pool.b_r.ravel(), pool.b_o.ravel()]).astype(jnp.float32)
    s_ker = gatv2_score(x, pool.w_r, params_chk, xl_chk, adj_chk, block_rows=32)

    xr_ref = x @ pool.w_r.T + pool.b_r
    xl_ref = (x @ pool.w_l.T + pool.b_l).T
    m_ref = xr_ref + xl_ref
    m_ref = jnp.where(m_ref > 0, m_ref, 0.2 * m_ref)
    e_ref = m_ref * pool.att[0, 0]
    e_ref = jnp.where(adj_chk > 0, e_ref, -1e30)
    p_ref = jnp.exp(e_ref - e_ref.max(axis=1, keepdims=True))
    s_ref = (p_ref * xl_ref).sum(axis=1, keepdims=True) / \
            p_ref.sum(axis=1, keepdims=True) + pool.b_o[0, 0]
    assert bool(jnp.allclose(s_ker, s_ref, rtol=2e-2, atol=2e-2)), "score mismatch"

    # Gate check (uses the kernel's own score, so only the fused gather/tanh differ).
    gate_ref = x[perm, :] * jnp.tanh(s_ker[:, 0][perm])[:, None]
    assert bool(jnp.allclose(x_out, gate_ref, rtol=1e-3, atol=1e-3)), "gate mismatch"

    print("KERNEL_OK")
</pallas_src>

<mosaic_0001>
module attributes {stable_mosaic.version = 11 : i64} {
  func.func @_gatv2_score_kernel(%arg0: i32, %arg1: memref<3xf32, #tpu.memory_space<smem>>, %arg2: memref<32x8xf32, #tpu.memory_space<vmem>>, %arg3: memref<1x8xf32, #tpu.memory_space<vmem>>, %arg4: memref<1x64xf32, #tpu.memory_space<vmem>>, %arg5: memref<32x64xi8, #tpu.memory_space<vmem>>, %arg6: memref<32x1xf32, #tpu.memory_space<vmem>>) attributes {dimension_semantics = [#tpu.dimension_semantics<parallel>], iteration_bounds = array<i64: 2>, scalar_prefetch = 0 : i64, scratch_operands = 0 : i64, tpu.core_type = #tpu.core_type<tc>, window_params = [{transform_indices = @transform_0, window_bounds = array<i64: 3>}, {transform_indices = @transform_1, window_bounds = array<i64: 32, 8>}, {pipeline_mode = #tpu.pipeline_mode<synchronous>, transform_indices = @transform_2, window_bounds = array<i64: 1, 8>}, {pipeline_mode = #tpu.pipeline_mode<synchronous>, transform_indices = @transform_3, window_bounds = array<i64: 1, 64>}, {transform_indices = @transform_4, window_bounds = array<i64: 32, 64>}, {transform_indices = @transform_5, window_bounds = array<i64: 32, 1>}]} {
    %c0 = arith.constant 0 : index
    %0 = memref.load %arg1[%c0] : memref<3xf32, #tpu.memory_space<smem>>
    %c1 = arith.constant 1 : index
    %1 = memref.load %arg1[%c1] : memref<3xf32, #tpu.memory_space<smem>>
    %c2 = arith.constant 2 : index
    %2 = memref.load %arg1[%c2] : memref<3xf32, #tpu.memory_space<smem>>
    %c0_0 = arith.constant 0 : index
    %c0_1 = arith.constant 0 : index
    %3 = vector.load %arg2[%c0_0, %c0_1] : memref<32x8xf32, #tpu.memory_space<vmem>>, vector<32x8xf32>
    %c0_2 = arith.constant 0 : index
    %c0_3 = arith.constant 0 : index
    %4 = vector.load %arg3[%c0_2, %c0_3] : memref<1x8xf32, #tpu.memory_space<vmem>>, vector<1x8xf32>
    %5 = vector.broadcast %4 : vector<1x8xf32> to vector<32x8xf32>
    %6 = arith.mulf %3, %5 : vector<32x8xf32>
    %cst = arith.constant dense<0.000000e+00> : vector<32xf32>
    %7 = vector.multi_reduction <add>, %6, %cst [1] : vector<32x8xf32> to vector<32xf32>
    %8 = vector.shape_cast %7 : vector<32xf32> to vector<32x1xf32>
    %9 = vector.broadcast %1 : f32 to vector<32x1xf32>
    %10 = arith.addf %8, %9 : vector<32x1xf32>
    %c0_4 = arith.constant 0 : index
    %c0_5 = arith.constant 0 : index
    %11 = vector.load %arg4[%c0_4, %c0_5] : memref<1x64xf32, #tpu.memory_space<vmem>>, vector<1x64xf32>
    %12 = vector.broadcast %10 : vector<32x1xf32> to vector<32x64xf32>
    %13 = vector.broadcast %11 : vector<1x64xf32> to vector<32x64xf32>
    %14 = arith.addf %12, %13 : vector<32x64xf32>
    %cst_6 = arith.constant 0.000000e+00 : f32
    %15 = vector.broadcast %cst_6 : f32 to vector<32x64xf32>
    %16 = arith.cmpf ogt, %14, %15 : vector<32x64xf32>
    %cst_7 = arith.constant 2.000000e-01 : f32
    %17 = vector.broadcast %cst_7 : f32 to vector<32x64xf32>
    %18 = arith.mulf %17, %14 : vector<32x64xf32>
    %19 = arith.select %16, %14, %18 : vector<32x64xi1>, vector<32x64xf32>
    %20 = vector.broadcast %0 : f32 to vector<32x64xf32>
    %21 = arith.mulf %19, %20 : vector<32x64xf32>
    %c0_8 = arith.constant 0 : index
    %c0_9 = arith.constant 0 : index
    %22 = vector.load %arg5[%c0_8, %c0_9] : memref<32x64xi8, #tpu.memory_space<vmem>>, vector<32x64xi8>
    %23 = arith.sitofp %22 : vector<32x64xi8> to vector<32x64xf32>
    %cst_10 = arith.constant 0.000000e+00 : f32
    %24 = vector.broadcast %cst_10 : f32 to vector<32x64xf32>
    %25 = arith.cmpf ogt, %23, %24 : vector<32x64xf32>
    %cst_11 = arith.constant -1.000000e+30 : f32
    %26 = vector.broadcast %cst_11 : f32 to vector<32x64xf32>
    %27 = arith.select %25, %21, %26 : vector<32x64xi1>, vector<32x64xf32>
    %cst_12 = arith.constant dense<0xFF800000> : vector<32xf32>
    %28 = vector.multi_reduction <maximumf>, %27, %cst_12 [1] : vector<32x64xf32> to vector<32xf32>
    %29 = vector.shape_cast %28 : vector<32xf32> to vector<32x1xf32>
    %30 = vector.broadcast %29 : vector<32x1xf32> to vector<32x64xf32>
    %31 = arith.subf %27, %30 : vector<32x64xf32>
    %32 = math.exp %31 : vector<32x64xf32>
    %cst_13 = arith.constant dense<0.000000e+00> : vector<32xf32>
    %33 = vector.multi_reduction <add>, %32, %cst_13 [1] : vector<32x64xf32> to vector<32xf32>
    %34 = vector.shape_cast %33 : vector<32xf32> to vector<32x1xf32>
    %35 = vector.broadcast %11 : vector<1x64xf32> to vector<32x64xf32>
    %36 = arith.mulf %32, %35 : vector<32x64xf32>
    %cst_14 = arith.constant dense<0.000000e+00> : vector<32xf32>
    %37 = vector.multi_reduction <add>, %36, %cst_14 [1] : vector<32x64xf32> to vector<32xf32>
    %38 = vector.shape_cast %37 : vector<32xf32> to vector<32x1xf32>
    %39 = tpu.reciprocal %34 {approx = true} : vector<32x1xf32> -> vector<32x1xf32>
    %40 = arith.mulf %38, %39 : vector<32x1xf32>
    %41 = vector.broadcast %2 : f32 to vector<32x1xf32>
    %42 = arith.addf %40, %41 : vector<32x1xf32>
    %c0_15 = arith.constant 0 : index
    %c0_16 = arith.constant 0 : index
    %43 = vector.load %arg6[%c0_15, %c0_16] : memref<32x1xf32, #tpu.memory_space<vmem>>, vector<32x1xf32>
    tpu.vector_store %arg6[%c0_15, %c0_16], %42 {strides = array<i32>} : memref<32x1xf32, #tpu.memory_space<vmem>>, vector<32x1xf32>,
    return
  }
  func.func @transform_0(%arg0: i32) -> i32 {
    %c0_i32 = arith.constant 0 : i32
    %c0_i32_0 = arith.constant 0 : i32
    return %c0_i32 : i32
  }
  func.func @transform_1(%arg0: i32) -> (i32, i32) {
    %c0_i32 = arith.constant 0 : i32
    %c0_i32_0 = arith.constant 0 : i32
    return %arg0, %c0_i32 : i32, i32
  }
  func.func @transform_2(%arg0: i32) -> (i32, i32) {
    %c0_i32 = arith.constant 0 : i32
    %c0_i32_0 = arith.constant 0 : i32
    %c0_i32_1 = arith.constant 0 : i32
    return %c0_i32, %c0_i32_0 : i32, i32
  }
  func.func @transform_3(%arg0: i32) -> (i32, i32) {
    %c0_i32 = arith.constant 0 : i32
    %c0_i32_0 = arith.constant 0 : i32
    %c0_i32_1 = arith.constant 0 : i32
    return %c0_i32, %c0_i32_0 : i32, i32
  }
  func.func @transform_4(%arg0: i32) -> (i32, i32) {
    %c0_i32 = arith.constant 0 : i32
    %c0_i32_0 = arith.constant 0 : i32
    return %arg0, %c0_i32 : i32, i32
  }
  func.func @transform_5(%arg0: i32) -> (i32, i32) {
    %c0_i32 = arith.constant 0 : i32
    %c0_i32_0 = arith.constant 0 : i32
    return %arg0, %c0_i32 : i32, i32
  }
}

</mosaic_0001>

<bundles_post_ra>
// kernel: tpu_custom_call.1
= control target key start
LH: loop header
LB: loop body
LE: loop exit
PB: predicated region body
PF: predicated region fallthrough
CT: control target
= control target key end

     0   :  { %10 = vsyncpa [#allocation3], 0  ;;  %s596_s18 = smov 0   ;;  %s660_s0 = inlined_call_operand.vmem [shape: f32[3], index: 0, kind: input, shape index: {}]   ;;  %s661_s1 = inlined_call_operand.vmem [shape: f32[64,8], index: 1, kind: input, shape index: {}]   ;;  %s662_s2 = inlined_call_operand.vmem [shape: f32[1,8], index: 2, kind: input, shape index: {}]   ;;  %s663_s3 = inlined_call_operand.vmem [shape: f32[1,64], index: 3, kind: input, shape index: {}]   ;;  %s664_s4 = inlined_call_operand.vmem [shape: s8[64,64], index: 4, kind: input, shape index: {}]   ;;  %s665_s5 = inlined_call_operand.vmem [shape: f32[64,1], index: 5, kind: output, shape index: {}]  }
   0x1 LB: > { %s602_s19 = sadd.s32 4294967295, %s563_s18   ;;  %p487_p0 = scmp.ge.s32.totalorder %s563_s18, 1  ;;  %s563_s18 = sphi %s596_s18, %s16_s18  }
   0x2   : > { %p162_p1 = scmp.lt.s32.totalorder %s563_s18, 3  ;;  %s174_s22 = sshll.u32 %s660_s0, 4  ;;  %s175_s22 = int_to_ptr.vmem [resolvable:$true] %s174_s22 }
   0x3   : > { %p509_p3 = scmp.eq.s32.totalorder %s602_s19, 0  ;;  %s565_s23 = smov [#allocation2]  }
   0x4   : > { %p163_p2 = pnand %p487_p0, %p162_p1 }
   0x6   : > { %p505_p4 = pneg %p163_p2  ;;  %209 = sbr.rel (%p163_p2) target bundleno = 425 (0x1a9), region = 40 }
   0x8   : > { %p506_p5 = pnand %p509_p3, %p505_p4 }
   0xa   : > { %508 = dma.vmem_to_smem (!%p506_p5), %s175_s22, 16, %s565_s23, [#allocation3]  }
   0xb   : > { %558 = dma.done.wait (%p509_p3), [#allocation3], 16  }
   0xc   : > { %560 = vsyncadd (%p509_p3), [#allocation3], 4294967280 }
   0xd   : > { %216 = sfence }
   0xe   : > { %s492_s24 = sshll.u32 %s602_s19, 2  ;;  %v520_v0 = vld [vmem:[%s662_s2] ss:$0 sm:$0xff]  ;;  %vm274_vm0 = vcmask 64512   ;;  %p249_p7 = scmp.lt.s32.totalorder %s602_s19, 1  ;;  %vm334_vm5 = vcmask 523264  }
   0xf   : > { %p244_p6 = scmp.lt.s32.totalorder %s492_s24, 7  ;;  %s497_s6 = sld [smem:[#allocation2 + $0x1]]  ;;  %v630_v15 = vld [vmem:[%s663_s3] ss:$0 sm:$0xff]  ;;  %vm400_vm10 = vcmask 7168  }
  0x10   : > { %s669_s19 = smov (!%p249_p7, %s602_s19), 1  ;;  %s259_s11 = sld [smem:[#allocation2]] }
  0x11   : > { %s667_s24 = smov (!%p244_p6, %s492_s24), 7  ;;  %s494_s7 = sshll.u32 %s669_s19, 3 }
  0x12   : > { %s493_s27 = sshll.u32 %s667_s24, 3  ;;  %s252_s10 = scalar_lea.vmem %s664_s4, %s494_s7 }
  0x13   : > { %s247_s30 = scalar_lea.vmem %s661_s1, %s493_s27  ;;  %v317_v13 = vld [vmem:[%s252_s10] sm:$0xff]  ;;  %s498_s14 = sld [smem:[#allocation2 + $0x2]] }
  0x14   : > { %v264_v1 = vld [vmem:[%s247_s30 + $0x10] sm:$0xff]  ;;  %v262_v2 = vld [vmem:[%s247_s30] sm:$0xff]  ;;  %v265_v5 = vld [vmem:[%s247_s30 + $0x18] sm:$0xff]  ;;  %v320_v16 = vunpack.c.2.s8 %v317_v13  ;;  %v318_v17 = vunpack.c.0.s8 %v317_v13  ;;  %v321_v29 = vunpack.c.3.s8 %v317_v13  ;;  %v319_v30 = vunpack.c.1.s8 %v317_v13  ;;  %s257_s17 = scalar_lea.vmem %s665_s5, %s493_s27 }
  0x15   : > { %v272_v3 = vmul.f32 %v520_v0, %v264_v1  ;;  %v270_v4 = vmul.f32 %v520_v0, %v262_v2  ;;  %v263_v6 = vld [vmem:[%s247_s30 + $0x8] sm:$0xff]  ;;  %v273_v9 = vmul.f32 %v520_v0, %v265_v5  ;;  %v287_v14 = vstv %s497_s6 }
  0x16   : > { %v271_v10 = vmul.f32 %v520_v0, %v263_v6  ;;  %v324_v24 = vcvt.s32.f32 %v320_v16  ;;  %v322_v25 = vcvt.s32.f32 %v318_v17  ;;  %v312_v26 = vstv %s259_s11 }
  0x17   : > { %v281_v7 = vsel %vm274_vm0, %v272_v3, 0.0  ;;  %v275_v8 = vsel %vm274_vm0, %v270_v4, 0.0  ;;  %v284_v11 = vsel %vm274_vm0, %v273_v9, 0.0  ;;  %v325_v41 = vcvt.s32.f32 %v321_v29 }
  0x18   : > { %282 = vadd.xlane.f32.xlu1 %v281_v7  ;;  %276 = vadd.xlane.f32.xlu0 %v275_v8  ;;  %v278_v12 = vsel %vm274_vm0, %v271_v10, 0.0  ;;  %vm328_vm3 = vcmp.gt.f32.partialorder %v324_v24, 0.0  ;;  %vm326_vm4 = vcmp.gt.f32.partialorder %v322_v25, 0.0  ;;  %v323_v42 = vcvt.s32.f32 %v319_v30 }
  0x19   : > { %vm329_vm8 = vcmp.gt.f32.partialorder %v325_v41, 0.0 }
  0x1a   : > { %vm327_vm9 = vcmp.gt.f32.partialorder %v323_v42, 0.0 }
  0x20   : > { %285 = vadd.xlane.f32.xlu1 %v284_v11  ;;  %279 = vadd.xlane.f32.xlu0 %v278_v12 }
  0x8b   : > { %v283_v18 = vpop.xlane.xlu1 %282  ;;  %v277_v19 = vpop.xlane.xlu0 %276 }
  0x8c   : > { %v290_v20 = vadd.f32 %v287_v14, %v283_v18  ;;  %v288_v21 = vadd.f32 %v287_v14, %v277_v19 }
  0x8e   : > { %v298_v22 = vadd.f32 %v630_v15, %v290_v20  ;;  %v296_v23 = vadd.f32 %v630_v15, %v288_v21 }
  0x90   : > { %v306_v27 = vmul.f32 0.2, %v298_v22  ;;  %v304_v28 = vmul.f32 0.2, %v296_v23  ;;  %vm302_vm1 = vcmp.gt.f32.partialorder %v298_v22, 0.0  ;;  %vm300_vm2 = vcmp.gt.f32.partialorder %v296_v23, 0.0 }
  0x92   : > { %v310_v31 = vsel %vm302_vm1, %v298_v22, %v306_v27  ;;  %v308_v32 = vsel %vm300_vm2, %v296_v23, %v304_v28 }
  0x93   : > { %v286_v33 = vpop.xlane.xlu1 %285  ;;  %v280_v34 = vpop.xlane.xlu0 %279  ;;  %v315_v35 = vmul.f32 %v312_v26, %v310_v31  ;;  %v313_v36 = vmul.f32 %v312_v26, %v308_v32  ;;  %v395_v31 = vstv %s498_s14 }
  0x94   : > { %v291_v37 = vadd.f32 %v287_v14, %v286_v33  ;;  %v289_v38 = vadd.f32 %v287_v14, %v280_v34 }
  0x95   : > { %v332_v39 = vsel %vm328_vm3, %v315_v35, -1e+30  ;;  %v330_v40 = vsel %vm326_vm4, %v313_v36, -1e+30 }
  0x96   : > { %v299_v43 = vadd.f32 %v630_v15, %v291_v37  ;;  %v297_v44 = vadd.f32 %v630_v15, %v289_v38  ;;  %v341_v45 = vsel %vm334_vm5, %v332_v39, -inf  ;;  %v335_v46 = vsel %vm334_vm5, %v330_v40, -inf }
  0x97   : > { %342 = vmax.xlane.f32.xlu0 %v341_v45  ;;  %336 = vmax.xlane.f32.xlu2 %v335_v46 }
  0x98   : > { %v307_v47 = vmul.f32 0.2, %v299_v43  ;;  %v305_v48 = vmul.f32 0.2, %v297_v44  ;;  %vm303_vm6 = vcmp.gt.f32.partialorder %v299_v43, 0.0  ;;  %vm301_vm7 = vcmp.gt.f32.partialorder %v297_v44, 0.0 }
  0x9a   : > { %v311_v49 = vsel %vm303_vm6, %v299_v43, %v307_v47  ;;  %v309_v50 = vsel %vm301_vm7, %v297_v44, %v305_v48 }
  0x9b   : > { %v316_v51 = vmul.f32 %v312_v26, %v311_v49  ;;  %v314_v52 = vmul.f32 %v312_v26, %v309_v50 }
  0x9d   : > { %v333_v53 = vsel %vm329_vm8, %v316_v51, -1e+30  ;;  %v331_v54 = vsel %vm327_vm9, %v314_v52, -1e+30 }
  0x9e   : > { %v344_v55 = vsel %vm334_vm5, %v333_v53, -inf  ;;  %v338_v56 = vsel %vm334_vm5, %v331_v54, -inf }
  0x9f   : > { %345 = vmax.xlane.f32.xlu1 %v344_v55  ;;  %339 = vmax.xlane.f32.xlu2 %v338_v56 }
 0x10a   : > { %v337_v57 = vpop.xlane.xlu2 %336  ;;  %v343_v58 = vpop.xlane.xlu0 %342 }
 0x10b   : > { %v347_v59 = vsub.f32 %v330_v40, %v337_v57  ;;  %v349_v60 = vsub.f32 %v332_v39, %v343_v58 }
 0x10d   : > { %v351_v61 = vmul.f32 1.442695, %v347_v59  ;;  %v355_v62 = vmul.f32 1.442695, %v349_v60 }
 0x10f   : > { %522 = vpow2.f32 %v351_v61 }
 0x110   : > { %524 = vpow2.f32 %v355_v62 }
 0x112   : > { %v346_v63 = vpop.xlane.xlu1 %345  ;;  %v340_v0 = vpop.xlane.xlu2 %339 }
 0x113   : > { %v350_v1 = vsub.f32 %v333_v53, %v346_v63  ;;  %v348_v2 = vsub.f32 %v331_v54, %v340_v0 }
 0x115   : > { %v523_v3 = vpop.eup %522  ;;  %v357_v4 = vmul.f32 1.442695, %v350_v1  ;;  %v353_v5 = vmul.f32 1.442695, %v348_v2 }
 0x116   : > { %v525_v6 = vpop.eup %524  ;;  %v359_v7 = vsel %vm334_vm5, %v523_v3, 0.0  ;;  %v371_v17 = vmul.f32 %v523_v3, %v630_v15 }
 0x117   : > { %526 = vpow2.f32 %v357_v4  ;;  %360 = vadd.xlane.f32.xlu2 %v359_v7  ;;  %v365_v8 = vsel %vm334_vm5, %v525_v6, 0.0  ;;  %v373_v16 = vmul.f32 %v525_v6, %v630_v15 }
 0x118   : > { %528 = vpow2.f32 %v353_v5  ;;  %366 = vadd.xlane.f32.xlu1 %v365_v8  ;;  %v375_v19 = vsel %vm334_vm5, %v371_v17, 0.0 }
 0x119   : > { %v381_v18 = vsel %vm334_vm5, %v373_v16, 0.0 }
 0x11d   : > { %v527_v9 = vpop.eup %526 }
 0x11e   : > { %v529_v10 = vpop.eup %528  ;;  %v368_v11 = vsel %vm334_vm5, %v527_v9, 0.0  ;;  %v374_v20 = vmul.f32 %v527_v9, %v630_v15 }
 0x11f   : > { %369 = vadd.xlane.f32.xlu2 %v368_v11  ;;  %v362_v12 = vsel %vm334_vm5, %v529_v10, 0.0  ;;  %v372_v13 = vmul.f32 %v529_v10, %v630_v15 }
 0x120   : > { %363 = vadd.xlane.f32.xlu0 %v362_v12  ;;  %v384_v21 = vsel %vm334_vm5, %v374_v20, 0.0 }
 0x121   : > { %v378_v14 = vsel %vm334_vm5, %v372_v13, 0.0 }
 0x122   : > { %379 = vadd.xlane.f32.xlu1 %v378_v14 }
 0x127   : > { %382 = vadd.xlane.f32.xlu2 %v381_v18 }
 0x128   : > { %376 = vadd.xlane.f32.xlu0 %v375_v19 }
 0x130   : > { %385 = vadd.xlane.f32.xlu0 %v384_v21 }
 0x18a   : > { %v361_v22 = vpop.xlane.xlu2 %360 }
 0x18b   : > { %v367_v23 = vpop.xlane.xlu1 %366  ;;  %530 = vrcp.f32 %v361_v22 }
 0x191   : > { %v531_v26 = vpop.eup %530 }
 0x192   : > { %v370_v24 = vpop.xlane.xlu2 %369 }
 0x193   : > { %v364_v25 = vpop.xlane.xlu0 %363 }
 0x194   : > { %532 = vrcp.f32 %v364_v25 }
 0x195   : > { %534 = vrcp.f32 %v367_v23  ;;  %v380_v28 = vpop.xlane.xlu1 %379 }
 0x196   : > { %536 = vrcp.f32 %v370_v24 }
 0x19a   : > { %v533_v27 = vpop.eup %532  ;;  %v383_v29 = vpop.xlane.xlu2 %382 }
 0x19b   : > { %v535_v30 = vpop.eup %534  ;;  %v392_v32 = vmul.f32 %v533_v27, %v380_v28  ;;  %v377_v15 = vpop.xlane.xlu0 %376 }
 0x19c   : > { %v393_v33 = vmul.f32 %v535_v30, %v383_v29  ;;  %v391_v34 = vmul.f32 %v531_v26, %v377_v15  ;;  %v537_v38 = vpop.eup %536 }
 0x19d   : > { %v397_v36 = vadd.f32 %v395_v31, %v392_v32 }
 0x19e   : > { %v396_v35 = vadd.f32 %v395_v31, %v391_v34  ;;  %v398_v37 = vadd.f32 %v395_v31, %v393_v33 }
 0x19f   : > { %402 = vst.msk [vmem:[%s257_s17 + $0x8] sm:$0xff] %vm400_vm10, %v397_v36 }
 0x1a0   : > { %401 = vst.msk [vmem:[%s257_s17] sm:$0xff] %vm400_vm10, %v396_v35 }
 0x1a1   : > { %403 = vst.msk [vmem:[%s257_s17 + $0x10] sm:$0xff] %vm400_vm10, %v398_v37 }
 0x1a3   : > { %v386_v39 = vpop.xlane.xlu0 %385 }
 0x1a4   : > { %v394_v40 = vmul.f32 %v537_v38, %v386_v39 }
 0x1a6   : > { %v399_v41 = vadd.f32 %v395_v31, %v394_v40 }
 0x1a8   : > { %404 = vst.msk [vmem:[%s257_s17 + $0x18] sm:$0xff] %vm400_vm10, %v399_v41 }
 0x1a9 PF: > { %s16_s18 = sadd.s32 1, %s563_s18  }
 0x1aa   : > { %p13_p8 = scmp.ge.s32.totalorder %s16_s18, 4  }
 0x1ac   :  { %15 = sbr.rel (!%p13_p8) target bundleno = 1 (0x1), region = 78 }
 0x1b1   :  { %427 = vsyncpa [#allocation3], 1 }
 0x1b2   :  { %429 = vsyncpa [#allocation3 + $0x1], 1 }

</bundles_post_ra>
